<compile_context>
chip_gen: v5e
topology: v5e:2x2
jax: 0.10.0
libtpu: 0.0.40
codegen_flags: <defaults>
</compile_context>

<pallas_src>
import functools

import numpy as np
import jax
import jax.numpy as jnp
from jax import lax
from jax.experimental import pallas as pl
from jax.experimental.pallas import tpu as pltpu


_OUT_LANES = 128  # one unmasked lane-dense output row

# packed output lane layout
_IDX_LOSS, _IDX_CONTRAST, _IDX_NEAR, _IDX_FAR, _IDX_KL = 0, 1, 2, 3, 4
_IDX_ST_ACC, _IDX_SI_ACC, _IDX_ACC = 5, 6, 7
_IDX_MEAN, _IDX_STD_MEAN, _IDX_STD_MAX = 8, 9, 10


# ----------------------------------------------------------------------------
# Fused kernel: CLIP-style contrastive loss + retrieval accuracies,
# vol/near BCEWithLogits + occupancy accuracy, KL(posterior || N(0, I)) + stats.
# ----------------------------------------------------------------------------
def _fused_loss_kernel(scale_ref, shape_ref, text_ref, image_ref,
                       logits_ref, labels_ref, pmean_ref, plogvar_ref,
                       out_ref, *, num_vol, kl_batch, has_post,
                       contrast_weight, near_weight, kl_weight, matmul_dtype):
    f32 = jnp.float32
    scale = scale_ref[0, 0]

    # ---------------- contrastive part (MXU) ----------------
    def l2norm(x):
        # F.normalize: x / max(||x||, 1e-12)  ==  x * rsqrt(max(||x||^2, 1e-24))
        n2 = jnp.sum(x * x, axis=-1, keepdims=True)
        return x * lax.rsqrt(jnp.maximum(n2, 1e-24))

    s = l2norm(shape_ref[...].astype(f32))
    t = l2norm(text_ref[...].astype(f32))
    im = l2norm(image_ref[...].astype(f32))

    # bf16 operands, f32 accumulation (full-rate MXU on v5e/v6e/v7x).
    sm = s.astype(matmul_dtype)
    tm = t.astype(matmul_dtype)
    imm = im.astype(matmul_dtype)
    dn = (((1,), (1,)), ((), ()))  # contract last dim of both operands (RHS "transposed" natively)
    l_st = scale * lax.dot_general(sm, tm, dn, preferred_element_type=f32)
    l_si = scale * lax.dot_general(sm, imm, dn, preferred_element_type=f32)
    # l_ts == l_st.T and l_is == l_si.T -> never materialized; handled via column-LSE.

    B = l_st.shape[0]
    row = lax.broadcasted_iota(jnp.int32, (B, B), 0)
    col = lax.broadcasted_iota(jnp.int32, (B, B), 1)
    diag = row == col

    def lse(x, axis):
        m = jnp.max(x, axis=axis, keepdims=True)
        return m + jnp.log(jnp.sum(jnp.exp(x - m), axis=axis, keepdims=True))

    def sym_ce(logits):
        # labels = arange(B) (rank 0, single device) -> targets are the diagonal,
        # identical for logits and logits.T.
        diag_sum = jnp.sum(jnp.where(diag, logits, 0.0))
        ce_row = (jnp.sum(lse(logits, -1)) - diag_sum) / B   # CE(logits, labels)
        ce_col = (jnp.sum(lse(logits, 0)) - diag_sum) / B    # CE(logits.T, labels)
        return ce_row, ce_col

    ce_st, ce_ts = sym_ce(l_st)
    ce_si, ce_is = sym_ce(l_si)
    contrast = (ce_st + ce_ts) / 2.0 + (ce_si + ce_is) / 2.0

    def diag_argmax_acc(logits):
        mx = jnp.max(logits, axis=-1, keepdims=True)
        # first index achieving the max (matches torch.argmax tie-breaking)
        pred = jnp.min(jnp.where(logits == mx, col, B), axis=-1, keepdims=True)
        correct = jnp.sum(jnp.where(pred == row[:, 0:1], 1.0, 0.0))
        return 100.0 * correct / B

    st_acc = diag_argmax_acc(l_st)
    si_acc = diag_argmax_acc(l_si)

    # ---------------- vol / near BCEWithLogits (VPU) ----------------
    x = logits_ref[...].astype(f32)
    z = labels_ref[...].astype(f32)
    Bg, N = x.shape
    # numerically stable BCEWithLogits: max(x,0) - x*z + log(1 + exp(-|x|))
    # (log(1+e) vs log1p differs by <~1e-7 abs here, far below tolerance)
    bce = jnp.maximum(x, 0.0) - x * z + jnp.log(1.0 + jnp.exp(-jnp.abs(x)))
    total_bce = jnp.sum(bce)
    colN = lax.broadcasted_iota(jnp.int32, (Bg, N), 1)
    vol_sum = jnp.sum(jnp.where(colN < num_vol, bce, 0.0))
    vol_bce = vol_sum / float(Bg * num_vol)
    near_bce = (total_bce - vol_sum) / float(Bg * (N - num_vol))
    pred_occ = jnp.where(x >= 0.0, 1.0, 0.0)
    occ_acc = jnp.mean(jnp.where(pred_occ == z, 1.0, 0.0))

    # ---------------- KL + posterior statistics ----------------
    if has_post:
        mu = pmean_ref[...].astype(f32)
        # DiagonalGaussianDistribution clamps logvar to [-30, 20] at construction.
        lv = jnp.clip(plogvar_ref[...].astype(f32), -30.0, 20.0)
        var = jnp.exp(lv)          # single EUP transcendental
        std = jnp.sqrt(var)
        kl = jnp.sum(0.5 * (mu * mu + var - 1.0 - lv)) / float(kl_batch)
        mean_mean = jnp.mean(mu)
        std_mean = jnp.mean(std)
        std_max = jnp.max(std)
    else:
        kl = jnp.float32(0.0)
        mean_mean = jnp.float32(0.0)
        std_mean = jnp.float32(0.0)
        std_max = jnp.float32(0.0)

    loss = (vol_bce + near_bce * near_weight + kl * kl_weight
            + contrast * contrast_weight)

    # ---------------- pack all scalars into one lane-dense row ----------------
    vals = (loss, contrast, near_bce, vol_bce, kl, st_acc, si_acc, occ_acc,
            mean_mean, std_mean, std_max)
    lane = lax.broadcasted_iota(jnp.int32, (1, _OUT_LANES), 1)
    packed = jnp.zeros((1, _OUT_LANES), f32)
    for i, v in enumerate(vals):
        packed = packed + jnp.where(lane == i, v, 0.0)
    out_ref[...] = packed


# ----------------------------------------------------------------------------
# Wrapper (glue in plain JAX)
# ----------------------------------------------------------------------------
def _lane_dense_2d(x):
    """Flatten trailing dims; re-fold to a 128-wide last dim when possible."""
    x2 = jnp.reshape(x, (x.shape[0], -1))
    total = x2.shape[0] * x2.shape[1]
    if total % 128 == 0:
        return jnp.reshape(x2, (total // 128, 128))
    return x2


def contrast_kl_near_far(shape_embed, text_embed, image_embed, logit_scale,
                         post_mean, post_logvar, shape_logits, shape_labels,
                         *, contrast_weight=1.0, near_weight=0.1,
                         kl_weight=1.0, num_near_samples=None, split="train",
                         matmul_dtype=jnp.bfloat16):
    N = shape_logits.shape[1]
    num_vol = N // 2 if num_near_samples is None else N - num_near_samples

    has_post = post_mean is not None
    if has_post:
        kl_batch = post_mean.shape[0]
        pmean2d = _lane_dense_2d(post_mean)
        plogvar2d = _lane_dense_2d(post_logvar)
    else:
        kl_batch = 1
        pmean2d = jnp.zeros((1, 128), jnp.float32)
        plogvar2d = jnp.zeros((1, 128), jnp.float32)

    vmem = pl.BlockSpec(memory_space=pltpu.MemorySpace.VMEM)
    smem = pl.BlockSpec(memory_space=pltpu.MemorySpace.SMEM)
    scale_arr = jnp.asarray(logit_scale, jnp.float32).reshape(1, 1)

    # TODO(synk): distributed all_gather / get_rank path not implemented
    # (single-device assumption: labels = arange(B), *_all == local embeds).
    # TODO(synk): for production-scale B (>~1-2k) the BxB logits should be tiled
    # over a "key" grid axis with an online-softmax accumulator (v7x has 64 MiB
    # VMEM); at the small batches used here a single grid point is optimal.
    packed = pl.pallas_call(
        functools.partial(
            _fused_loss_kernel, num_vol=num_vol, kl_batch=kl_batch,
            has_post=has_post, contrast_weight=float(contrast_weight),
            near_weight=float(near_weight), kl_weight=float(kl_weight),
            matmul_dtype=matmul_dtype),
        out_shape=jax.ShapeDtypeStruct((1, _OUT_LANES), jnp.float32),
        in_specs=[smem] + [vmem] * 7,
        out_specs=vmem,
    )(scale_arr, shape_embed, text_embed, image_embed,
      shape_logits, shape_labels, pmean2d, plogvar2d)

    r = packed[0]
    loss = r[_IDX_LOSS]
    log = {
        f"{split}/contrast": r[_IDX_CONTRAST],
        f"{split}/near": r[_IDX_NEAR],
        f"{split}/far": r[_IDX_FAR],
        f"{split}/kl": r[_IDX_KL],
        f"{split}/shape_text_acc": r[_IDX_ST_ACC],
        f"{split}/shape_image_acc": r[_IDX_SI_ACC],
        f"{split}/total_loss": loss,
        f"{split}/accuracy": r[_IDX_ACC],
    }
    if has_post:
        log[f"{split}/mean"] = r[_IDX_MEAN]
        log[f"{split}/std_mean"] = r[_IDX_STD_MEAN]
        log[f"{split}/std_max"] = r[_IDX_STD_MAX]
    return loss, log


# ----------------------------------------------------------------------------
# Pure-JAX reference (for correctness check only)
# ----------------------------------------------------------------------------
def _reference_loss(shape_embed, text_embed, image_embed, logit_scale,
                    post_mean, post_logvar, shape_logits, shape_labels,
                    num_vol, near_weight, kl_weight, contrast_weight,
                    matmul_dtype=jnp.float32):
    def norm(x):
        return x / jnp.maximum(jnp.linalg.norm(x, axis=-1, keepdims=True), 1e-12)

    s = norm(shape_embed).astype(matmul_dtype)
    t = norm(text_embed).astype(matmul_dtype)
    im = norm(image_embed).astype(matmul_dtype)
    B = s.shape[0]
    idx = jnp.arange(B)

    def ce(l):
        return jnp.mean(jax.nn.logsumexp(l, axis=-1) - l[idx, idx])

    l_st = logit_scale * jnp.dot(s, t.T, preferred_element_type=jnp.float32)
    l_si = logit_scale * jnp.dot(s, im.T, preferred_element_type=jnp.float32)
    # CE(l_ts, labels) == CE(l_st.T, labels) since labels are the diagonal.
    contrast = (ce(l_st) + ce(l_st.T)) / 2 + (ce(l_si) + ce(l_si.T)) / 2

    def bce(x, z):
        return jnp.mean(jnp.maximum(x, 0) - x * z + jnp.log1p(jnp.exp(-jnp.abs(x))))

    vol_bce = bce(shape_logits[:, :num_vol], shape_labels[:, :num_vol])
    near_bce = bce(shape_logits[:, num_vol:], shape_labels[:, num_vol:])

    lv = jnp.clip(post_logvar, -30.0, 20.0)
    kl = jnp.mean(0.5 * jnp.sum(post_mean ** 2 + jnp.exp(lv) - 1.0 - lv, axis=(1, 2)))
    return vol_bce + near_bce * near_weight + kl * kl_weight + contrast * contrast_weight


if __name__ == "__main__":
    key = jax.random.PRNGKey(0)
    k1, k2, k3, k4, k5, k6, k7 = jax.random.split(key, 7)

    B, D = 8, 32          # batch, embedding dim
    N = 16                # queried SDF samples per shape (num_vol = 8)
    L, C = 8, 4           # posterior latent tokens / channels

    shape_embed = jax.random.normal(k1, (B, D), jnp.float32)
    text_embed = jax.random.normal(k2, (B, D), jnp.float32)
    image_embed = jax.random.normal(k3, (B, D), jnp.float32)
    shape_logits = jax.random.normal(k4, (B, N), jnp.float32) * 2.0
    shape_labels = jax.random.bernoulli(k5, 0.5, (B, N)).astype(jnp.float32)
    post_mean = jax.random.normal(k6, (B, L, C), jnp.float32) * 0.5
    post_logvar = jax.random.normal(k7, (B, L, C), jnp.float32) * 0.5
    logit_scale = jnp.float32(1.0 / 0.07)  # exp(learnable temperature), deterministic

    loss, log = contrast_kl_near_far(
        shape_embed, text_embed, image_embed, logit_scale,
        post_mean, post_logvar, shape_logits, shape_labels,
        contrast_weight=1.0, near_weight=0.1, kl_weight=1.0,
        num_near_samples=None, split="train")
    loss = jax.block_until_ready(loss)

    common = dict(num_vol=N // 2, near_weight=0.1, kl_weight=1.0,
                  contrast_weight=1.0)
    # (1) tight check against a reference that matches the kernel's bf16 MXU
    #     operands (f32 accumulation) -> verifies the kernel math itself.
    ref_bf16 = _reference_loss(shape_embed, text_embed, image_embed, logit_scale,
                               post_mean, post_logvar, shape_logits, shape_labels,
                               matmul_dtype=jnp.bfloat16, **common)
    np.testing.assert_allclose(np.asarray(loss), np.asarray(ref_bf16),
                               rtol=2e-3, atol=5e-4)
    # (2) spec-faithful f32 reference; looser tolerance absorbs the bf16-operand
    #     delta in the contrastive logits (standard CLIP mixed precision).
    ref_f32 = _reference_loss(shape_embed, text_embed, image_embed, logit_scale,
                              post_mean, post_logvar, shape_logits, shape_labels,
                              matmul_dtype=jnp.float32, **common)
    np.testing.assert_allclose(np.asarray(loss), np.asarray(ref_f32),
                               rtol=3e-2, atol=1e-3)
    print("KERNEL_OK")
</pallas_src>

<mosaic_0001>
module attributes {stable_mosaic.version = 11 : i64} {
  func.func @_fused_loss_kernel(%arg0: memref<1x1xf32, #tpu.memory_space<smem>>, %arg1: memref<8x32xf32, #tpu.memory_space<vmem>>, %arg2: memref<8x32xf32, #tpu.memory_space<vmem>>, %arg3: memref<8x32xf32, #tpu.memory_space<vmem>>, %arg4: memref<8x16xf32, #tpu.memory_space<vmem>>, %arg5: memref<8x16xf32, #tpu.memory_space<vmem>>, %arg6: memref<2x128xf32, #tpu.memory_space<vmem>>, %arg7: memref<2x128xf32, #tpu.memory_space<vmem>>, %arg8: memref<1x128xf32, #tpu.memory_space<vmem>>) attributes {dimension_semantics = [], scalar_prefetch = 0 : i64, scratch_operands = 0 : i64, tpu.core_type = #tpu.core_type<tc>} {
    %c0 = arith.constant 0 : index
    %c0_0 = arith.constant 0 : index
    %0 = memref.load %arg0[%c0, %c0_0] : memref<1x1xf32, #tpu.memory_space<smem>>
    %c0_1 = arith.constant 0 : index
    %c0_2 = arith.constant 0 : index
    %1 = vector.load %arg1[%c0_1, %c0_2] : memref<8x32xf32, #tpu.memory_space<vmem>>, vector<8x32xf32>
    %2 = arith.mulf %1, %1 : vector<8x32xf32>
    %cst = arith.constant dense<0.000000e+00> : vector<8xf32>
    %3 = vector.multi_reduction <add>, %2, %cst [1] : vector<8x32xf32> to vector<8xf32>
    %4 = vector.shape_cast %3 : vector<8xf32> to vector<8x1xf32>
    %cst_3 = arith.constant 1.000000e-24 : f32
    %5 = vector.broadcast %cst_3 : f32 to vector<8x1xf32>
    %6 = arith.maximumf %4, %5 : vector<8x1xf32>
    %7 = math.rsqrt %6 : vector<8x1xf32>
    %8 = vector.broadcast %7 : vector<8x1xf32> to vector<8x32xf32>
    %9 = arith.mulf %1, %8 : vector<8x32xf32>
    %c0_4 = arith.constant 0 : index
    %c0_5 = arith.constant 0 : index
    %10 = vector.load %arg2[%c0_4, %c0_5] : memref<8x32xf32, #tpu.memory_space<vmem>>, vector<8x32xf32>
    %11 = arith.mulf %10, %10 : vector<8x32xf32>
    %cst_6 = arith.constant dense<0.000000e+00> : vector<8xf32>
    %12 = vector.multi_reduction <add>, %11, %cst_6 [1] : vector<8x32xf32> to vector<8xf32>
    %13 = vector.shape_cast %12 : vector<8xf32> to vector<8x1xf32>
    %cst_7 = arith.constant 1.000000e-24 : f32
    %14 = vector.broadcast %cst_7 : f32 to vector<8x1xf32>
    %15 = arith.maximumf %13, %14 : vector<8x1xf32>
    %16 = math.rsqrt %15 : vector<8x1xf32>
    %17 = vector.broadcast %16 : vector<8x1xf32> to vector<8x32xf32>
    %18 = arith.mulf %10, %17 : vector<8x32xf32>
    %c0_8 = arith.constant 0 : index
    %c0_9 = arith.constant 0 : index
    %19 = vector.load %arg3[%c0_8, %c0_9] : memref<8x32xf32, #tpu.memory_space<vmem>>, vector<8x32xf32>
    %20 = arith.mulf %19, %19 : vector<8x32xf32>
    %cst_10 = arith.constant dense<0.000000e+00> : vector<8xf32>
    %21 = vector.multi_reduction <add>, %20, %cst_10 [1] : vector<8x32xf32> to vector<8xf32>
    %22 = vector.shape_cast %21 : vector<8xf32> to vector<8x1xf32>
    %cst_11 = arith.constant 1.000000e-24 : f32
    %23 = vector.broadcast %cst_11 : f32 to vector<8x1xf32>
    %24 = arith.maximumf %22, %23 : vector<8x1xf32>
    %25 = math.rsqrt %24 : vector<8x1xf32>
    %26 = vector.broadcast %25 : vector<8x1xf32> to vector<8x32xf32>
    %27 = arith.mulf %19, %26 : vector<8x32xf32>
    %28 = arith.truncf %9 : vector<8x32xf32> to vector<8x32xbf16>
    %29 = arith.truncf %18 : vector<8x32xf32> to vector<8x32xbf16>
    %30 = arith.truncf %27 : vector<8x32xf32> to vector<8x32xbf16>
    %cst_12 = arith.constant dense<0.000000e+00> : vector<8x8xf32>
    %31 = tpu.matmul %28, %29, %cst_12 {dimension_numbers = #tpu.dot_dimension_numbers<[1], [1], [0], [0], [0, 0, 1, 0], [], []>} : vector<8x32xbf16>, vector<8x32xbf16>, vector<8x8xf32> -> vector<8x8xf32>
    %32 = vector.broadcast %0 : f32 to vector<8x8xf32>
    %33 = arith.mulf %32, %31 : vector<8x8xf32>
    %cst_13 = arith.constant dense<0.000000e+00> : vector<8x8xf32>
    %34 = tpu.matmul %28, %30, %cst_13 {dimension_numbers = #tpu.dot_dimension_numbers<[1], [1], [0], [0], [0, 0, 1, 0], [], []>} : vector<8x32xbf16>, vector<8x32xbf16>, vector<8x8xf32> -> vector<8x8xf32>
    %35 = vector.broadcast %0 : f32 to vector<8x8xf32>
    %36 = arith.mulf %35, %34 : vector<8x8xf32>
    %37 = tpu.iota {dimensions = array<i32: 0>} : vector<8x8xi32>
    %38 = tpu.iota {dimensions = array<i32: 1>} : vector<8x8xi32>
    %39 = arith.cmpi eq, %37, %38 : vector<8x8xi32>
    %cst_14 = arith.constant 0.000000e+00 : f32
    %40 = vector.broadcast %cst_14 : f32 to vector<8x8xf32>
    %41 = arith.select %39, %33, %40 : vector<8x8xi1>, vector<8x8xf32>
    %42 = vector.shape_cast %41 : vector<8x8xf32> to vector<1x8x8xf32>
    %cst_15 = arith.constant dense<0.000000e+00> : vector<1xf32>
    %43 = vector.multi_reduction <add>, %42, %cst_15 [1, 2] : vector<1x8x8xf32> to vector<1xf32>
    %44 = vector.shape_cast %43 : vector<1xf32> to vector<1x1x1xf32>
    %45 = vector.extract %44[0, 0, 0] : f32 from vector<1x1x1xf32>
    %cst_16 = arith.constant dense<0xFF800000> : vector<8xf32>
    %46 = vector.multi_reduction <maximumf>, %33, %cst_16 [1] : vector<8x8xf32> to vector<8xf32>
    %47 = vector.shape_cast %46 : vector<8xf32> to vector<8x1xf32>
    %48 = vector.broadcast %47 : vector<8x1xf32> to vector<8x8xf32>
    %49 = arith.subf %33, %48 : vector<8x8xf32>
    %50 = math.exp %49 : vector<8x8xf32>
    %cst_17 = arith.constant dense<0.000000e+00> : vector<8xf32>
    %51 = vector.multi_reduction <add>, %50, %cst_17 [1] : vector<8x8xf32> to vector<8xf32>
    %52 = vector.shape_cast %51 : vector<8xf32> to vector<8x1xf32>
    %53 = math.log %52 : vector<8x1xf32>
    %54 = arith.addf %47, %53 : vector<8x1xf32>
    %55 = vector.shape_cast %54 : vector<8x1xf32> to vector<1x8x1xf32>
    %cst_18 = arith.constant dense<0.000000e+00> : vector<1xf32>
    %56 = vector.multi_reduction <add>, %55, %cst_18 [1, 2] : vector<1x8x1xf32> to vector<1xf32>
    %57 = vector.shape_cast %56 : vector<1xf32> to vector<1x1x1xf32>
    %58 = vector.extract %57[0, 0, 0] : f32 from vector<1x1x1xf32>
    %59 = arith.subf %58, %45 : f32
    %cst_19 = arith.constant 8.000000e+00 : f32
    %60 = arith.divf %59, %cst_19 : f32
    %cst_20 = arith.constant dense<0xFF800000> : vector<8xf32>
    %61 = vector.multi_reduction <maximumf>, %33, %cst_20 [0] : vector<8x8xf32> to vector<8xf32>
    %62 = vector.shape_cast %61 : vector<8xf32> to vector<1x8xf32>
    %63 = vector.broadcast %62 : vector<1x8xf32> to vector<8x8xf32>
    %64 = arith.subf %33, %63 : vector<8x8xf32>
    %65 = math.exp %64 : vector<8x8xf32>
    %cst_21 = arith.constant dense<0.000000e+00> : vector<8xf32>
    %66 = vector.multi_reduction <add>, %65, %cst_21 [0] : vector<8x8xf32> to vector<8xf32>
    %67 = vector.shape_cast %66 : vector<8xf32> to vector<1x8xf32>
    %68 = math.log %67 : vector<1x8xf32>
    %69 = arith.addf %62, %68 : vector<1x8xf32>
    %70 = vector.shape_cast %69 : vector<1x8xf32> to vector<1x1x8xf32>
    %cst_22 = arith.constant dense<0.000000e+00> : vector<1xf32>
    %71 = vector.multi_reduction <add>, %70, %cst_22 [1, 2] : vector<1x1x8xf32> to vector<1xf32>
    %72 = vector.shape_cast %71 : vector<1xf32> to vector<1x1x1xf32>
    %73 = vector.extract %72[0, 0, 0] : f32 from vector<1x1x1xf32>
    %74 = arith.subf %73, %45 : f32
    %cst_23 = arith.constant 8.000000e+00 : f32
    %75 = arith.divf %74, %cst_23 : f32
    %cst_24 = arith.constant 0.000000e+00 : f32
    %76 = vector.broadcast %cst_24 : f32 to vector<8x8xf32>
    %77 = arith.select %39, %36, %76 : vector<8x8xi1>, vector<8x8xf32>
    %78 = vector.shape_cast %77 : vector<8x8xf32> to vector<1x8x8xf32>
    %cst_25 = arith.constant dense<0.000000e+00> : vector<1xf32>
    %79 = vector.multi_reduction <add>, %78, %cst_25 [1, 2] : vector<1x8x8xf32> to vector<1xf32>
    %80 = vector.shape_cast %79 : vector<1xf32> to vector<1x1x1xf32>
    %81 = vector.extract %80[0, 0, 0] : f32 from vector<1x1x1xf32>
    %cst_26 = arith.constant dense<0xFF800000> : vector<8xf32>
    %82 = vector.multi_reduction <maximumf>, %36, %cst_26 [1] : vector<8x8xf32> to vector<8xf32>
    %83 = vector.shape_cast %82 : vector<8xf32> to vector<8x1xf32>
    %84 = vector.broadcast %83 : vector<8x1xf32> to vector<8x8xf32>
    %85 = arith.subf %36, %84 : vector<8x8xf32>
    %86 = math.exp %85 : vector<8x8xf32>
    %cst_27 = arith.constant dense<0.000000e+00> : vector<8xf32>
    %87 = vector.multi_reduction <add>, %86, %cst_27 [1] : vector<8x8xf32> to vector<8xf32>
    %88 = vector.shape_cast %87 : vector<8xf32> to vector<8x1xf32>
    %89 = math.log %88 : vector<8x1xf32>
    %90 = arith.addf %83, %89 : vector<8x1xf32>
    %91 = vector.shape_cast %90 : vector<8x1xf32> to vector<1x8x1xf32>
    %cst_28 = arith.constant dense<0.000000e+00> : vector<1xf32>
    %92 = vector.multi_reduction <add>, %91, %cst_28 [1, 2] : vector<1x8x1xf32> to vector<1xf32>
    %93 = vector.shape_cast %92 : vector<1xf32> to vector<1x1x1xf32>
    %94 = vector.extract %93[0, 0, 0] : f32 from vector<1x1x1xf32>
    %95 = arith.subf %94, %81 : f32
    %cst_29 = arith.constant 8.000000e+00 : f32
    %96 = arith.divf %95, %cst_29 : f32
    %cst_30 = arith.constant dense<0xFF800000> : vector<8xf32>
    %97 = vector.multi_reduction <maximumf>, %36, %cst_30 [0] : vector<8x8xf32> to vector<8xf32>
    %98 = vector.shape_cast %97 : vector<8xf32> to vector<1x8xf32>
    %99 = vector.broadcast %98 : vector<1x8xf32> to vector<8x8xf32>
    %100 = arith.subf %36, %99 : vector<8x8xf32>
    %101 = math.exp %100 : vector<8x8xf32>
    %cst_31 = arith.constant dense<0.000000e+00> : vector<8xf32>
    %102 = vector.multi_reduction <add>, %101, %cst_31 [0] : vector<8x8xf32> to vector<8xf32>
    %103 = vector.shape_cast %102 : vector<8xf32> to vector<1x8xf32>
    %104 = math.log %103 : vector<1x8xf32>
    %105 = arith.addf %98, %104 : vector<1x8xf32>
    %106 = vector.shape_cast %105 : vector<1x8xf32> to vector<1x1x8xf32>
    %cst_32 = arith.constant dense<0.000000e+00> : vector<1xf32>
    %107 = vector.multi_reduction <add>, %106, %cst_32 [1, 2] : vector<1x1x8xf32> to vector<1xf32>
    %108 = vector.shape_cast %107 : vector<1xf32> to vector<1x1x1xf32>
    %109 = vector.extract %108[0, 0, 0] : f32 from vector<1x1x1xf32>
    %110 = arith.subf %109, %81 : f32
    %cst_33 = arith.constant 8.000000e+00 : f32
    %111 = arith.divf %110, %cst_33 : f32
    %112 = arith.addf %60, %75 : f32
    %cst_34 = arith.constant 2.000000e+00 : f32
    %113 = arith.divf %112, %cst_34 : f32
    %114 = arith.addf %96, %111 : f32
    %cst_35 = arith.constant 2.000000e+00 : f32
    %115 = arith.divf %114, %cst_35 : f32
    %116 = arith.addf %113, %115 : f32
    %cst_36 = arith.constant dense<0xFF800000> : vector<8xf32>
    %117 = vector.multi_reduction <maximumf>, %33, %cst_36 [1] : vector<8x8xf32> to vector<8xf32>
    %118 = vector.shape_cast %117 : vector<8xf32> to vector<8x1xf32>
    %119 = vector.broadcast %118 : vector<8x1xf32> to vector<8x8xf32>
    %120 = arith.cmpf oeq, %33, %119 : vector<8x8xf32>
    %c8_i32 = arith.constant 8 : i32
    %121 = vector.broadcast %c8_i32 : i32 to vector<8x8xi32>
    %122 = arith.select %120, %38, %121 : vector<8x8xi1>, vector<8x8xi32>
    %cst_37 = arith.constant dense<2147483647> : vector<8xi32>
    %123 = vector.multi_reduction <minsi>, %122, %cst_37 [1] : vector<8x8xi32> to vector<8xi32>
    %124 = vector.shape_cast %123 : vector<8xi32> to vector<8x1xi32>
    %125 = vector.extract_strided_slice %37 {offsets = [0, 0], sizes = [8, 1], strides = [1, 1]} : vector<8x8xi32> to vector<8x1xi32>
    %126 = arith.cmpi eq, %124, %125 : vector<8x1xi32>
    %cst_38 = arith.constant 1.000000e+00 : f32
    %cst_39 = arith.constant 0.000000e+00 : f32
    %127 = vector.broadcast %cst_38 : f32 to vector<8x1xf32>
    %128 = vector.broadcast %cst_39 : f32 to vector<8x1xf32>
    %129 = arith.select %126, %127, %128 : vector<8x1xi1>, vector<8x1xf32>
    %130 = vector.shape_cast %129 : vector<8x1xf32> to vector<1x8x1xf32>
    %cst_40 = arith.constant dense<0.000000e+00> : vector<1xf32>
    %131 = vector.multi_reduction <add>, %130, %cst_40 [1, 2] : vector<1x8x1xf32> to vector<1xf32>
    %132 = vector.shape_cast %131 : vector<1xf32> to vector<1x1x1xf32>
    %133 = vector.extract %132[0, 0, 0] : f32 from vector<1x1x1xf32>
    %cst_41 = arith.constant 1.000000e+02 : f32
    %134 = arith.mulf %cst_41, %133 : f32
    %cst_42 = arith.constant 8.000000e+00 : f32
    %135 = arith.divf %134, %cst_42 : f32
    %cst_43 = arith.constant dense<0xFF800000> : vector<8xf32>
    %136 = vector.multi_reduction <maximumf>, %36, %cst_43 [1] : vector<8x8xf32> to vector<8xf32>
    %137 = vector.shape_cast %136 : vector<8xf32> to vector<8x1xf32>
    %138 = vector.broadcast %137 : vector<8x1xf32> to vector<8x8xf32>
    %139 = arith.cmpf oeq, %36, %138 : vector<8x8xf32>
    %c8_i32_44 = arith.constant 8 : i32
    %140 = vector.broadcast %c8_i32_44 : i32 to vector<8x8xi32>
    %141 = arith.select %139, %38, %140 : vector<8x8xi1>, vector<8x8xi32>
    %cst_45 = arith.constant dense<2147483647> : vector<8xi32>
    %142 = vector.multi_reduction <minsi>, %141, %cst_45 [1] : vector<8x8xi32> to vector<8xi32>
    %143 = vector.shape_cast %142 : vector<8xi32> to vector<8x1xi32>
    %144 = vector.extract_strided_slice %37 {offsets = [0, 0], sizes = [8, 1], strides = [1, 1]} : vector<8x8xi32> to vector<8x1xi32>
    %145 = arith.cmpi eq, %143, %144 : vector<8x1xi32>
    %cst_46 = arith.constant 1.000000e+00 : f32
    %cst_47 = arith.constant 0.000000e+00 : f32
    %146 = vector.broadcast %cst_46 : f32 to vector<8x1xf32>
    %147 = vector.broadcast %cst_47 : f32 to vector<8x1xf32>
    %148 = arith.select %145, %146, %147 : vector<8x1xi1>, vector<8x1xf32>
    %149 = vector.shape_cast %148 : vector<8x1xf32> to vector<1x8x1xf32>
    %cst_48 = arith.constant dense<0.000000e+00> : vector<1xf32>
    %150 = vector.multi_reduction <add>, %149, %cst_48 [1, 2] : vector<1x8x1xf32> to vector<1xf32>
    %151 = vector.shape_cast %150 : vector<1xf32> to vector<1x1x1xf32>
    %152 = vector.extract %151[0, 0, 0] : f32 from vector<1x1x1xf32>
    %cst_49 = arith.constant 1.000000e+02 : f32
    %153 = arith.mulf %cst_49, %152 : f32
    %cst_50 = arith.constant 8.000000e+00 : f32
    %154 = arith.divf %153, %cst_50 : f32
    %c0_51 = arith.constant 0 : index
    %c0_52 = arith.constant 0 : index
    %155 = vector.load %arg4[%c0_51, %c0_52] : memref<8x16xf32, #tpu.memory_space<vmem>>, vector<8x16xf32>
    %c0_53 = arith.constant 0 : index
    %c0_54 = arith.constant 0 : index
    %156 = vector.load %arg5[%c0_53, %c0_54] : memref<8x16xf32, #tpu.memory_space<vmem>>, vector<8x16xf32>
    %cst_55 = arith.constant 0.000000e+00 : f32
    %157 = vector.broadcast %cst_55 : f32 to vector<8x16xf32>
    %158 = arith.maximumf %155, %157 : vector<8x16xf32>
    %159 = arith.mulf %155, %156 : vector<8x16xf32>
    %160 = arith.subf %158, %159 : vector<8x16xf32>
    %161 = math.absf %155 : vector<8x16xf32>
    %cst_56 = arith.constant 0.000000e+00 : f32
    %162 = vector.broadcast %cst_56 : f32 to vector<8x16xf32>
    %163 = arith.subf %162, %161 : vector<8x16xf32>
    %164 = math.exp %163 : vector<8x16xf32>
    %cst_57 = arith.constant 1.000000e+00 : f32
    %165 = vector.broadcast %cst_57 : f32 to vector<8x16xf32>
    %166 = arith.addf %165, %164 : vector<8x16xf32>
    %167 = math.log %166 : vector<8x16xf32>
    %168 = arith.addf %160, %167 : vector<8x16xf32>
    %169 = vector.shape_cast %168 : vector<8x16xf32> to vector<1x8x16xf32>
    %cst_58 = arith.constant dense<0.000000e+00> : vector<1xf32>
    %170 = vector.multi_reduction <add>, %169, %cst_58 [1, 2] : vector<1x8x16xf32> to vector<1xf32>
    %171 = vector.shape_cast %170 : vector<1xf32> to vector<1x1x1xf32>
    %172 = vector.extract %171[0, 0, 0] : f32 from vector<1x1x1xf32>
    %173 = tpu.iota {dimensions = array<i32: 1>} : vector<8x16xi32>
    %c8_i32_59 = arith.constant 8 : i32
    %174 = vector.broadcast %c8_i32_59 : i32 to vector<8x16xi32>
    %175 = arith.cmpi slt, %173, %174 : vector<8x16xi32>
    %cst_60 = arith.constant 0.000000e+00 : f32
    %176 = vector.broadcast %cst_60 : f32 to vector<8x16xf32>
    %177 = arith.select %175, %168, %176 : vector<8x16xi1>, vector<8x16xf32>
    %178 = vector.shape_cast %177 : vector<8x16xf32> to vector<1x8x16xf32>
    %cst_61 = arith.constant dense<0.000000e+00> : vector<1xf32>
    %179 = vector.multi_reduction <add>, %178, %cst_61 [1, 2] : vector<1x8x16xf32> to vector<1xf32>
    %180 = vector.shape_cast %179 : vector<1xf32> to vector<1x1x1xf32>
    %181 = vector.extract %180[0, 0, 0] : f32 from vector<1x1x1xf32>
    %cst_62 = arith.constant 6.400000e+01 : f32
    %182 = arith.divf %181, %cst_62 : f32
    %183 = arith.subf %172, %181 : f32
    %cst_63 = arith.constant 6.400000e+01 : f32
    %184 = arith.divf %183, %cst_63 : f32
    %cst_64 = arith.constant 0.000000e+00 : f32
    %185 = vector.broadcast %cst_64 : f32 to vector<8x16xf32>
    %186 = arith.cmpf oge, %155, %185 : vector<8x16xf32>
    %cst_65 = arith.constant 1.000000e+00 : f32
    %cst_66 = arith.constant 0.000000e+00 : f32
    %187 = vector.broadcast %cst_65 : f32 to vector<8x16xf32>
    %188 = vector.broadcast %cst_66 : f32 to vector<8x16xf32>
    %189 = arith.select %186, %187, %188 : vector<8x16xi1>, vector<8x16xf32>
    %190 = arith.cmpf oeq, %189, %156 : vector<8x16xf32>
    %cst_67 = arith.constant 1.000000e+00 : f32
    %cst_68 = arith.constant 0.000000e+00 : f32
    %191 = vector.broadcast %cst_67 : f32 to vector<8x16xf32>
    %192 = vector.broadcast %cst_68 : f32 to vector<8x16xf32>
    %193 = arith.select %190, %191, %192 : vector<8x16xi1>, vector<8x16xf32>
    %194 = vector.shape_cast %193 : vector<8x16xf32> to vector<1x8x16xf32>
    %cst_69 = arith.constant dense<0.000000e+00> : vector<1xf32>
    %195 = vector.multi_reduction <add>, %194, %cst_69 [1, 2] : vector<1x8x16xf32> to vector<1xf32>
    %196 = vector.shape_cast %195 : vector<1xf32> to vector<1x1x1xf32>
    %197 = vector.extract %196[0, 0, 0] : f32 from vector<1x1x1xf32>
    %cst_70 = arith.constant 1.280000e+02 : f32
    %198 = arith.divf %197, %cst_70 : f32
    %c0_71 = arith.constant 0 : index
    %c0_72 = arith.constant 0 : index
    %199 = vector.load %arg6[%c0_71, %c0_72] : memref<2x128xf32, #tpu.memory_space<vmem>>, vector<2x128xf32>
    %c0_73 = arith.constant 0 : index
    %c0_74 = arith.constant 0 : index
    %200 = vector.load %arg7[%c0_73, %c0_74] : memref<2x128xf32, #tpu.memory_space<vmem>>, vector<2x128xf32>
    %cst_75 = arith.constant -3.000000e+01 : f32
    %cst_76 = arith.constant 2.000000e+01 : f32
    %201 = vector.broadcast %cst_75 : f32 to vector<2x128xf32>
    %202 = arith.maximumf %201, %200 : vector<2x128xf32>
    %203 = vector.broadcast %cst_76 : f32 to vector<2x128xf32>
    %204 = arith.minimumf %203, %202 : vector<2x128xf32>
    %205 = math.exp %204 : vector<2x128xf32>
    %206 = math.sqrt %205 : vector<2x128xf32>
    %207 = arith.mulf %199, %199 : vector<2x128xf32>
    %208 = arith.addf %207, %205 : vector<2x128xf32>
    %cst_77 = arith.constant 1.000000e+00 : f32
    %209 = vector.broadcast %cst_77 : f32 to vector<2x128xf32>
    %210 = arith.subf %208, %209 : vector<2x128xf32>
    %211 = arith.subf %210, %204 : vector<2x128xf32>
    %cst_78 = arith.constant 5.000000e-01 : f32
    %212 = vector.broadcast %cst_78 : f32 to vector<2x128xf32>
    %213 = arith.mulf %212, %211 : vector<2x128xf32>
    %214 = vector.shape_cast %213 : vector<2x128xf32> to vector<1x2x128xf32>
    %cst_79 = arith.constant dense<0.000000e+00> : vector<1xf32>
    %215 = vector.multi_reduction <add>, %214, %cst_79 [1, 2] : vector<1x2x128xf32> to vector<1xf32>
    %216 = vector.shape_cast %215 : vector<1xf32> to vector<1x1x1xf32>
    %217 = vector.extract %216[0, 0, 0] : f32 from vector<1x1x1xf32>
    %cst_80 = arith.constant 8.000000e+00 : f32
    %218 = arith.divf %217, %cst_80 : f32
    %219 = vector.shape_cast %199 : vector<2x128xf32> to vector<1x2x128xf32>
    %cst_81 = arith.constant dense<0.000000e+00> : vector<1xf32>
    %220 = vector.multi_reduction <add>, %219, %cst_81 [1, 2] : vector<1x2x128xf32> to vector<1xf32>
    %221 = vector.shape_cast %220 : vector<1xf32> to vector<1x1x1xf32>
    %222 = vector.extract %221[0, 0, 0] : f32 from vector<1x1x1xf32>
    %cst_82 = arith.constant 2.560000e+02 : f32
    %223 = arith.divf %222, %cst_82 : f32
    %224 = vector.shape_cast %206 : vector<2x128xf32> to vector<1x2x128xf32>
    %cst_83 = arith.constant dense<0.000000e+00> : vector<1xf32>
    %225 = vector.multi_reduction <add>, %224, %cst_83 [1, 2] : vector<1x2x128xf32> to vector<1xf32>
    %226 = vector.shape_cast %225 : vector<1xf32> to vector<1x1x1xf32>
    %227 = vector.extract %226[0, 0, 0] : f32 from vector<1x1x1xf32>
    %cst_84 = arith.constant 2.560000e+02 : f32
    %228 = arith.divf %227, %cst_84 : f32
    %229 = vector.shape_cast %206 : vector<2x128xf32> to vector<1x2x128xf32>
    %cst_85 = arith.constant dense<0xFF800000> : vector<1xf32>
    %230 = vector.multi_reduction <maximumf>, %229, %cst_85 [1, 2] : vector<1x2x128xf32> to vector<1xf32>
    %231 = vector.shape_cast %230 : vector<1xf32> to vector<1x1x1xf32>
    %232 = vector.extract %231[0, 0, 0] : f32 from vector<1x1x1xf32>
    %cst_86 = arith.constant 1.000000e-01 : f32
    %233 = arith.mulf %184, %cst_86 : f32
    %234 = arith.addf %182, %233 : f32
    %cst_87 = arith.constant 1.000000e+00 : f32
    %235 = arith.mulf %218, %cst_87 : f32
    %236 = arith.addf %234, %235 : f32
    %cst_88 = arith.constant 1.000000e+00 : f32
    %237 = arith.mulf %116, %cst_88 : f32
    %238 = arith.addf %236, %237 : f32
    %239 = tpu.iota {dimensions = array<i32: 1>} : vector<1x128xi32>
    %cst_89 = arith.constant 0.000000e+00 : f32
    %240 = vector.broadcast %cst_89 : f32 to vector<1x128xf32>
    %c0_i32 = arith.constant 0 : i32
    %241 = vector.broadcast %c0_i32 : i32 to vector<1x128xi32>
    %242 = arith.cmpi eq, %239, %241 : vector<1x128xi32>
    %cst_90 = arith.constant 0.000000e+00 : f32
    %243 = vector.broadcast %238 : f32 to vector<1x128xf32>
    %244 = vector.broadcast %cst_90 : f32 to vector<1x128xf32>
    %245 = arith.select %242, %243, %244 : vector<1x128xi1>, vector<1x128xf32>
    %246 = arith.addf %240, %245 : vector<1x128xf32>
    %c1_i32 = arith.constant 1 : i32
    %247 = vector.broadcast %c1_i32 : i32 to vector<1x128xi32>
    %248 = arith.cmpi eq, %239, %247 : vector<1x128xi32>
    %cst_91 = arith.constant 0.000000e+00 : f32
    %249 = vector.broadcast %116 : f32 to vector<1x128xf32>
    %250 = vector.broadcast %cst_91 : f32 to vector<1x128xf32>
    %251 = arith.select %248, %249, %250 : vector<1x128xi1>, vector<1x128xf32>
    %252 = arith.addf %246, %251 : vector<1x128xf32>
    %c2_i32 = arith.constant 2 : i32
    %253 = vector.broadcast %c2_i32 : i32 to vector<1x128xi32>
    %254 = arith.cmpi eq, %239, %253 : vector<1x128xi32>
    %cst_92 = arith.constant 0.000000e+00 : f32
    %255 = vector.broadcast %184 : f32 to vector<1x128xf32>
    %256 = vector.broadcast %cst_92 : f32 to vector<1x128xf32>
    %257 = arith.select %254, %255, %256 : vector<1x128xi1>, vector<1x128xf32>
    %258 = arith.addf %252, %257 : vector<1x128xf32>
    %c3_i32 = arith.constant 3 : i32
    %259 = vector.broadcast %c3_i32 : i32 to vector<1x128xi32>
    %260 = arith.cmpi eq, %239, %259 : vector<1x128xi32>
    %cst_93 = arith.constant 0.000000e+00 : f32
    %261 = vector.broadcast %182 : f32 to vector<1x128xf32>
    %262 = vector.broadcast %cst_93 : f32 to vector<1x128xf32>
    %263 = arith.select %260, %261, %262 : vector<1x128xi1>, vector<1x128xf32>
    %264 = arith.addf %258, %263 : vector<1x128xf32>
    %c4_i32 = arith.constant 4 : i32
    %265 = vector.broadcast %c4_i32 : i32 to vector<1x128xi32>
    %266 = arith.cmpi eq, %239, %265 : vector<1x128xi32>
    %cst_94 = arith.constant 0.000000e+00 : f32
    %267 = vector.broadcast %218 : f32 to vector<1x128xf32>
    %268 = vector.broadcast %cst_94 : f32 to vector<1x128xf32>
    %269 = arith.select %266, %267, %268 : vector<1x128xi1>, vector<1x128xf32>
    %270 = arith.addf %264, %269 : vector<1x128xf32>
    %c5_i32 = arith.constant 5 : i32
    %271 = vector.broadcast %c5_i32 : i32 to vector<1x128xi32>
    %272 = arith.cmpi eq, %239, %271 : vector<1x128xi32>
    %cst_95 = arith.constant 0.000000e+00 : f32
    %273 = vector.broadcast %135 : f32 to vector<1x128xf32>
    %274 = vector.broadcast %cst_95 : f32 to vector<1x128xf32>
    %275 = arith.select %272, %273, %274 : vector<1x128xi1>, vector<1x128xf32>
    %276 = arith.addf %270, %275 : vector<1x128xf32>
    %c6_i32 = arith.constant 6 : i32
    %277 = vector.broadcast %c6_i32 : i32 to vector<1x128xi32>
    %278 = arith.cmpi eq, %239, %277 : vector<1x128xi32>
    %cst_96 = arith.constant 0.000000e+00 : f32
    %279 = vector.broadcast %154 : f32 to vector<1x128xf32>
    %280 = vector.broadcast %cst_96 : f32 to vector<1x128xf32>
    %281 = arith.select %278, %279, %280 : vector<1x128xi1>, vector<1x128xf32>
    %282 = arith.addf %276, %281 : vector<1x128xf32>
    %c7_i32 = arith.constant 7 : i32
    %283 = vector.broadcast %c7_i32 : i32 to vector<1x128xi32>
    %284 = arith.cmpi eq, %239, %283 : vector<1x128xi32>
    %cst_97 = arith.constant 0.000000e+00 : f32
    %285 = vector.broadcast %198 : f32 to vector<1x128xf32>
    %286 = vector.broadcast %cst_97 : f32 to vector<1x128xf32>
    %287 = arith.select %284, %285, %286 : vector<1x128xi1>, vector<1x128xf32>
    %288 = arith.addf %282, %287 : vector<1x128xf32>
    %c8_i32_98 = arith.constant 8 : i32
    %289 = vector.broadcast %c8_i32_98 : i32 to vector<1x128xi32>
    %290 = arith.cmpi eq, %239, %289 : vector<1x128xi32>
    %cst_99 = arith.constant 0.000000e+00 : f32
    %291 = vector.broadcast %223 : f32 to vector<1x128xf32>
    %292 = vector.broadcast %cst_99 : f32 to vector<1x128xf32>
    %293 = arith.select %290, %291, %292 : vector<1x128xi1>, vector<1x128xf32>
    %294 = arith.addf %288, %293 : vector<1x128xf32>
    %c9_i32 = arith.constant 9 : i32
    %295 = vector.broadcast %c9_i32 : i32 to vector<1x128xi32>
    %296 = arith.cmpi eq, %239, %295 : vector<1x128xi32>
    %cst_100 = arith.constant 0.000000e+00 : f32
    %297 = vector.broadcast %228 : f32 to vector<1x128xf32>
    %298 = vector.broadcast %cst_100 : f32 to vector<1x128xf32>
    %299 = arith.select %296, %297, %298 : vector<1x128xi1>, vector<1x128xf32>
    %300 = arith.addf %294, %299 : vector<1x128xf32>
    %c10_i32 = arith.constant 10 : i32
    %301 = vector.broadcast %c10_i32 : i32 to vector<1x128xi32>
    %302 = arith.cmpi eq, %239, %301 : vector<1x128xi32>
    %cst_101 = arith.constant 0.000000e+00 : f32
    %303 = vector.broadcast %232 : f32 to vector<1x128xf32>
    %304 = vector.broadcast %cst_101 : f32 to vector<1x128xf32>
    %305 = arith.select %302, %303, %304 : vector<1x128xi1>, vector<1x128xf32>
    %306 = arith.addf %300, %305 : vector<1x128xf32>
    %c0_102 = arith.constant 0 : index
    %c0_103 = arith.constant 0 : index
    %307 = vector.load %arg8[%c0_102, %c0_103] : memref<1x128xf32, #tpu.memory_space<vmem>>, vector<1x128xf32>
    tpu.vector_store %arg8[%c0_102, %c0_103], %306 {strides = array<i32>} : memref<1x128xf32, #tpu.memory_space<vmem>>, vector<1x128xf32>,
    return
  }
}

</mosaic_0001>

<bundles_post_ra>
// kernel: tpu_custom_call.1
= control target key start
LH: loop header
LB: loop body
LE: loop exit
PB: predicated region body
PF: predicated region fallthrough
CT: control target
= control target key end

     0   :  { %14 = vsyncpa [#allocation4], 0  ;;  %s1173_s0 = inlined_call_operand.<no memory space> [shape: f32[1,1], index: 0, kind: input, shape index: {}]   ;;  %s1174_s1 = inlined_call_operand.hbm [shape: f32[8,32], index: 1, kind: input, shape index: {}]   ;;  %s1175_s2 = inlined_call_operand.hbm [shape: f32[8,32], index: 2, kind: input, shape index: {}]   ;;  %s1176_s3 = inlined_call_operand.hbm [shape: f32[8,32], index: 3, kind: input, shape index: {}]   ;;  %s1177_s4 = inlined_call_operand.hbm [shape: f32[8,16], index: 4, kind: input, shape index: {}]   ;;  %s1178_s5 = inlined_call_operand.hbm [shape: f32[8,16], index: 5, kind: input, shape index: {}]   ;;  %s1179_s6 = inlined_call_operand.vmem [shape: f32[2,128], index: 6, kind: input, shape index: {}]   ;;  %s1180_s7 = inlined_call_operand.vmem [shape: f32[2,128], index: 7, kind: input, shape index: {}]   ;;  %s1181_s8 = inlined_call_operand.hbm [shape: f32[1,128], index: 8, kind: output, shape index: {}]  }
   0x1   :  { %15 = vsyncpa [#allocation7], 0 }
   0x2   :  { %16 = vsyncpa [#allocation10], 0  ;;  %s36_s29 = sshll.u32 %s1175_s2, 4  ;;  %s37_s29 = int_to_ptr.hbm [resolvable:$true] %s36_s29 }
   0x3   :  { %17 = vsyncpa [#allocation5], 0  ;;  %s949_s30 = smov [#allocation6]   ;;  %s58_s12 = sshll.u32 %s1177_s4, 4  ;;  %s59_s12 = int_to_ptr.hbm [resolvable:$true] %s58_s12 }
   0x4   :  { %s38_s9 = sshll.u32 %s949_s30, 4  ;;  %s950_s13 = smov [#allocation9]   ;;  %s39_s9 = int_to_ptr.vmem [resolvable:$true] %s38_s9 }
   0x5   :  { %41 = dma.hbm_to_vmem [thread:$0]  %s37_s29, 128, %s39_s9, [#allocation7]  }
   0x6   :  { %s60_s14 = sshll.u32 %s950_s13, 4  ;;  %s25_s17 = sshll.u32 %s1174_s1, 4  ;;  %s61_s14 = int_to_ptr.vmem [resolvable:$true] %s60_s14  ;;  %s26_s17 = int_to_ptr.hbm [resolvable:$true] %s25_s17 }
   0x7   :  { %63 = dma.hbm_to_vmem [thread:$0]  %s59_s12, 128, %s61_s14, [#allocation10]  }
   0x8   :  { %s47_s19 = sshll.u32 %s1176_s3, 4  ;;  %s951_s20 = smov [#allocation3]   ;;  %s48_s19 = int_to_ptr.hbm [resolvable:$true] %s47_s19 }
   0x9   :  { %s27_s21 = sshll.u32 %s951_s20, 4  ;;  %s952_s4 = smov [#allocation8]   ;;  %s28_s21 = int_to_ptr.vmem [resolvable:$true] %s27_s21 }
   0xa   :  { %30 = dma.hbm_to_vmem [thread:$0]  %s26_s17, 128, %s28_s21, [#allocation4]  }
   0xb   :  { %s49_s22 = sshll.u32 %s952_s4, 4  ;;  %s69_s25 = sshll.u32 %s1178_s5, 4  ;;  %s50_s22 = int_to_ptr.vmem [resolvable:$true] %s49_s22  ;;  %s70_s25 = int_to_ptr.hbm [resolvable:$true] %s69_s25 }
   0xc   :  { %52 = dma.hbm_to_vmem [thread:$0]  %s48_s19, 128, %s50_s22, [#allocation7]  }
   0xd   :  { %s953_s1 = smov [#allocation11]  }
   0xe   :  { %s71_s26 = sshll.u32 %s953_s1, 4  ;;  %s72_s26 = int_to_ptr.vmem [resolvable:$true] %s71_s26 }
   0xf   :  { %74 = dma.hbm_to_vmem [thread:$0]  %s70_s25, 128, %s72_s26, [#allocation10]  }
  0x10   :  { %941 = dma.done.wait [#allocation4], 128  }
  0x11   :  { %942 = vsyncadd [#allocation4], 4294967168 }
  0x12   :  { %943 = dma.done.wait [#allocation7], 256  }
  0x13   :  { %944 = vsyncadd [#allocation7], 4294967040 }
  0x14   :  { %945 = dma.done.wait [#allocation10], 256  }
  0x15   :  { %946 = vsyncadd [#allocation10], 4294967040  ;;  %vm103_vm0 = vcmask 261120   ;;  %v119_v0 = vld [vmem:[#allocation6] sm:$0xff]  ;;  %v101_v1 = vld [vmem:[#allocation3] sm:$0xff]  ;;  %v175_v44 = vstv %s1173_s0  ;;  %vm200_vm10 = vcmask 64512   ;;  %v194_v53 = vlaneseq }
  0x16   :  { %v120_v2 = vmul.f32 %v119_v0, %v119_v0  ;;  %v102_v3 = vmul.f32 %v101_v1, %v101_v1  ;;  %v136_v4 = vld [vmem:[#allocation8] sm:$0xff] }
  0x17   :  { %v137_v7 = vmul.f32 %v136_v4, %v136_v4  ;;  %v1035_v55 = vand.u32 127, %v194_v53 }
  0x18   :  { %v121_v5 = vsel %vm103_vm0, %v120_v2, 0.0  ;;  %v104_v6 = vsel %vm103_vm0, %v102_v3, 0.0 }
  0x19   :  { %122 = vadd.xlane.f32.xlu0 %v121_v5  ;;  %105 = vadd.xlane.f32.xlu1 %v104_v6  ;;  %v138_v8 = vsel %vm103_vm0, %v137_v7, 0.0  ;;  %v1060_v7 = vshrl.u32 %v194_v53, 7 }
  0x1b   :  { %vm198_vm13 = vcmp.eq.s32.totalorder %v1060_v7, %v1035_v55 }
  0x21   :  { %139 = vadd.xlane.f32.xlu0 %v138_v8 }
  0x8c   :  { %v123_v9 = vpop.xlane.xlu0 %122  ;;  %v106_v10 = vpop.xlane.xlu1 %105 }
  0x8d   :  { %v124_v11 = vmax.f32 %v123_v9, 1e-24  ;;  %v107_v12 = vmax.f32 %v106_v10, 1e-24 }
  0x8f   :  { %757 = vrsqrt.f32 %v124_v11  ;;  %vm131_vm2 = vweird.f32 %v124_v11  ;;  %vm114_vm3 = vweird.f32 %v107_v12 }
  0x90   :  { %759 = vrsqrt.f32 %v107_v12 }
  0x94   :  { %v140_v13 = vpop.xlane.xlu0 %139 }
  0x95   :  { %v758_v14 = vpop.eup %757  ;;  %v141_v15 = vmax.f32 %v140_v13, 1e-24 }
  0x96   :  { %v760_v16 = vpop.eup %759  ;;  %v126_v17 = vmul.f32 %v758_v14, %v124_v11  ;;  %vm132_vm1 = vweird.f32 %v758_v14 }
  0x97   :  { %v109_v18 = vmul.f32 %v760_v16, %v107_v12  ;;  %761 = vrsqrt.f32 %v141_v15  ;;  %vm133_vm4 = vmor %vm131_vm2, %vm132_vm1  ;;  %vm115_vm5 = vweird.f32 %v760_v16  ;;  %vm148_vm8 = vweird.f32 %v141_v15 }
  0x98   :  { %v127_v19 = vmul.f32 %v758_v14, %v126_v17  ;;  %vm116_vm6 = vmor %vm114_vm3, %vm115_vm5  ;;  %vm263_vm1 = vcmask 57344   ;;  %vm478_vm2 = vcmask 130048   ;;  %vm566_vm3 = vcmask 1041408  }
  0x99   :  { %v110_v20 = vmul.f32 %v760_v16, %v109_v18 }
  0x9a   :  { %v128_v21 = vmul.f32 0.5, %v127_v19 }
  0x9b   :  { %v111_v22 = vmul.f32 0.5, %v110_v20 }
  0x9c   :  { %v129_v23 = vsub.f32 1.5, %v128_v21 }
  0x9d   :  { %v762_v24 = vpop.eup %761  ;;  %v112_v25 = vsub.f32 1.5, %v111_v22 }
  0x9e   :  { %v143_v26 = vmul.f32 %v762_v24, %v141_v15  ;;  %v130_v27 = vmul.f32 %v758_v14, %v129_v23  ;;  %vm149_vm7 = vweird.f32 %v762_v24 }
  0x9f   :  { %v113_v30 = vmul.f32 %v760_v16, %v112_v25  ;;  %vm150_vm9 = vmor %vm148_vm8, %vm149_vm7  ;;  %vm489_vm7 = vcmp.lt.s32.totalorder %v1035_v55, 8 }
  0xa0   :  { %v144_v28 = vmul.f32 %v762_v24, %v143_v26  ;;  %v134_v29 = vsel %vm133_vm4, %v758_v14, %v130_v27 }
  0xa1   :  { %v135_v31 = vmul.f32 %v134_v29, %v119_v0  ;;  %v117_v35 = vsel %vm116_vm6, %v760_v16, %v113_v30 }
  0xa2   :  { %v145_v32 = vmul.f32 0.5, %v144_v28  ;;  %v118_v38 = vmul.f32 %v117_v35, %v101_v1 }
  0xa3   :  { %v154_v33 = vpack.c.bf16 %v135_v31, %v135_v31 }
  0xa4   :  { %v146_v34 = vsub.f32 1.5, %v145_v32  ;;  %v153_v41 = vpack.c.bf16 %v118_v38, %v118_v38 }
  0xa5   :  { %v160_v36 = vsel %vm103_vm0, %v154_v33, 0 }
  0xa6   :  { %169 = vmatpush.bf16.xpose.msra.mxu0 %v160_v36  ;;  %v147_v37 = vmul.f32 %v762_v24, %v146_v34 }
  0xa8   :  { %v151_v39 = vsel %vm150_vm9, %v762_v24, %v147_v37 }
  0xa9   :  { %v152_v40 = vmul.f32 %v151_v39, %v136_v4 }
  0xab   :  { %v155_v42 = vpack.c.bf16 %v152_v40, %v152_v40 }
  0xad   :  { %702 = vmatmul.msk.bf16.vlgmr.msra.gmra.mxu0 %vm103_vm0, %v153_v41  ;;  %v178_v43 = vsel %vm103_vm0, %v155_v42, 0 }
  0xae   :  { %187 = vmatpush.bf16.xpose.msra.mxu1 %v178_v43 }
  0xb5   :  { %703 = vmatmul.msk.bf16.vlgmr.msra.gmra.mxu1 %vm103_vm0, %v153_v41  ;;  %vm223_vm0 = vcmask 7168  }
 0x12a   :  { %v171_v45 = vpop.f32.mrf.mxu0 }
 0x12b   :  { %v176_v46 = vmul.f32 %v175_v44, %v171_v45 }
 0x12d   :  { %v211_v47 = vsel %vm200_vm10, %v176_v46, -inf  ;;  %v199_v10 = vsel %vm198_vm13, %v176_v46, 0.0 }
 0x12e   :  { %212 = vmax.xlane.f32.xlu1 %v211_v47  ;;  %v201_v11 = vsel %vm200_vm10, %v199_v10, 0.0  ;;  %v244_v14 = vrot.slane %v211_v47, 4 }
 0x130   :  { %v245_v15 = vmax.f32 %v211_v47, %v244_v14 }
 0x132   :  { %v173_v48 = vpop.f32.mrf.mxu0  ;;  %v189_v49 = vpop.f32.mrf.mxu1  ;;  %v246_v16 = vrot.slane %v245_v15, 2 }
 0x133   :  { %v193_v50 = vmul.f32 %v189_v49, %v175_v44 }
 0x134   :  { %v247_v18 = vmax.f32 %v245_v15, %v246_v16 }
 0x135   :  { %v295_v51 = vsel %vm200_vm10, %v193_v50, -inf  ;;  %v284_v12 = vsel %vm198_vm13, %v193_v50, 0.0 }
 0x136   :  { %296 = vmax.xlane.f32.xlu2 %v295_v51  ;;  %v285_v13 = vsel %vm200_vm10, %v284_v12, 0.0  ;;  %v327_v17 = vrot.slane %v295_v51, 4  ;;  %v248_v21 = vrot.slane %v247_v18, 1 }
 0x138   :  { %v328_v19 = vmax.f32 %v295_v51, %v327_v17  ;;  %v249_v23 = vmax.f32 %v247_v18, %v248_v21  ;;  %v1085_v18 = vld [vmem:[#allocation9] sm:$0xff] }
 0x139   :  { %vm520_vm8 = vcmp.ge.f32.partialorder %v1085_v18, 0.0 }
 0x13a   :  { %v191_v52 = vpop.f32.mrf.mxu1  ;;  %v329_v20 = vrot.slane %v328_v19, 2  ;;  %v250_v24 = vsub.f32 %v176_v46, %v249_v23 }
 0x13c   :  { %v330_v22 = vmax.f32 %v328_v19, %v329_v20  ;;  %v251_v26 = vmul.f32 1.442695, %v250_v24  ;;  %v470_v19 = vand.u32 2147483647, %v1085_v18 }
 0x13e   :  { %v331_v25 = vrot.slane %v330_v22, 1  ;;  %v471_v20 = vsub.f32 0.0, %v470_v19 }
 0x140   :  { %v332_v27 = vmax.f32 %v330_v22, %v331_v25  ;;  %v472_v21 = vmul.f32 1.442695, %v471_v20  ;;  %v544_v22 = vld [vmem:[%s1180_s7] sm:$0x3] }
 0x141   :  { %v545_v24 = vmax.f32 %v544_v22, -30.0 }
 0x142   :  { %v333_v28 = vsub.f32 %v193_v50, %v332_v27 }
 0x143   :  { %v546_v25 = vmin.f32 %v545_v24, 20.0 }
 0x144   :  { %v334_v29 = vmul.f32 1.442695, %v333_v28  ;;  %v467_v28 = vmax.f32 %v1085_v18, 0.0 }
 0x1a1   :  { %v1033_v54 = vpop.xlane.xlu1 %212 }
 0x1a2   :  { %v214_v56 = vsub.f32 %v176_v46, %v1033_v54  ;;  %vm387_vm11 = vcmp.eq.f32.partialorder %v176_v46, %v1033_v54 }
 0x1a3   :  { %v388_v57 = vsel %vm387_vm11, %v1035_v55, 8 }
 0x1a4   :  { %v215_v58 = vmul.f32 1.442695, %v214_v56  ;;  %v1041_v59 = vsel %vm200_vm10, %v388_v57, 2147483647 }
 0x1a5   :  { %v391_v60 = vshra.s32 %v1041_v59, 16  ;;  %v390_v42 = vand.u32 65535, %v1041_v59 }
 0x1a6   :  { %763 = vpow2.f32 %v215_v58 }
 0x1a7   :  { %v1044_v61 = vcvt.s32.f32 %v391_v60  ;;  %v392_v46 = vcvt.s32.f32 %v390_v42 }
 0x1a9   :  { %v1046_v62 = vpop.xlane.xlu2 %296  ;;  %394 = vmin.xlane.f32.xlu2 %v1044_v61 }
 0x1aa   :  { %v298_v63 = vsub.f32 %v193_v50, %v1046_v62  ;;  %vm426_vm12 = vcmp.eq.f32.partialorder %v193_v50, %v1046_v62 }
 0x1ab   :  { %v427_v0 = vsel %vm426_vm12, %v1035_v55, 8 }
 0x1ac   :  { %v764_v1 = vpop.eup %763  ;;  %v299_v2 = vmul.f32 1.442695, %v298_v63  ;;  %v1053_v3 = vsel %vm200_vm10, %v427_v0, 2147483647 }
 0x1ad   :  { %v217_v4 = vsel %vm200_vm10, %v764_v1, 0.0  ;;  %v430_v5 = vshra.s32 %v1053_v3, 16  ;;  %v429_v49 = vand.u32 65535, %v1053_v3 }
 0x1ae   :  { %765 = vpow2.f32 %v299_v2  ;;  %218 = vadd.xlane.f32.xlu1 %v217_v4 }
 0x1af   :  { %v1057_v6 = vcvt.s32.f32 %v430_v5  ;;  %767 = vpow2.f32 %v251_v26  ;;  %v431_v56 = vcvt.s32.f32 %v429_v49  ;;  %v547_v26 = vmul.f32 1.442695, %v546_v25 }
 0x1b0   :  { %769 = vpow2.f32 %v334_v29 }
 0x1b1   :  { %433 = vmin.xlane.f32.xlu0 %v1057_v6 }
 0x1b4   :  { %v766_v8 = vpop.eup %765 }
 0x1b5   :  { %v301_v9 = vsel %vm200_vm10, %v766_v8, 0.0  ;;  %v768_v30 = vpop.eup %767 }
 0x1b6   :  { %302 = vadd.xlane.f32.xlu2 %v301_v9  ;;  %v253_v31 = vsel %vm200_vm10, %v768_v30, 0.0  ;;  %v770_v33 = vpop.eup %769 }
 0x1b7   :  { %v254_v32 = vrot.slane %v253_v31, 4  ;;  %v336_v35 = vsel %vm200_vm10, %v770_v33, 0.0  ;;  %v1099_v33 = vld [vmem:[%s1179_s6] sm:$0x3] }
 0x1b8   :  { %v337_v37 = vrot.slane %v336_v35, 4 }
 0x1b9   :  { %v255_v34 = vadd.f32 %v254_v32, %v253_v31 }
 0x1ba   :  { %v338_v39 = vadd.f32 %v337_v37, %v336_v35  ;;  %v561_v35 = vmul.f32 %v1099_v33, %v1099_v33 }
 0x1bb   :  { %v256_v36 = vrot.slane %v255_v34, 2 }
 0x1bc   :  { %v339_v41 = vrot.slane %v338_v39, 2 }
 0x1bd   :  { %v257_v38 = vadd.f32 %v256_v36, %v255_v34 }
 0x1be   :  { %202 = vadd.xlane.f32.xlu2 %v201_v11  ;;  %v340_v44 = vadd.f32 %v339_v41, %v338_v39 }
 0x1bf   :  { %v258_v40 = vrot.slane %v257_v38, 1 }
 0x1c0   :  { %v341_v47 = vrot.slane %v340_v44, 1 }
 0x1c1   :  { %v259_v43 = vadd.f32 %v258_v40, %v257_v38 }
 0x1c2   :  { %v342_v51 = vadd.f32 %v341_v47, %v340_v44 }
 0x1c3   :  { %771 = vlog2.f32 %v259_v43 }
 0x1c6   :  { %286 = vadd.xlane.f32.xlu2 %v285_v13 }
 0x1c9   :  { %v772_v52 = vpop.eup %771 }
 0x1ca   :  { %v261_v58 = vmul.f32 0.6931472, %v772_v52 }
 0x1cc   :  { %v262_v63 = vadd.f32 %v261_v58, %v249_v23 }
 0x1ce   :  { %v264_v3 = vsel %vm263_vm1, %v262_v63, 0.0 }
 0x21c   :  { %v1070_v45 = vpop.xlane.xlu2 %394 }
 0x21d   :  { %vm396_vm14 = vcmp.eq.f32.partialorder %v1044_v61, %v1070_v45  ;;  %v401_v47 = vcvt.f32.s32 %v1070_v45  ;;  %v955_v45 = vmov 0.0  }
 0x21e   :  { %v397_v48 = vsel %vm396_vm14, %v392_v46, inf }
 0x21f   :  { %398 = vmin.xlane.f32.xlu0 %v397_v48 }
 0x221   :  { %v219_v50 = vpop.xlane.xlu1 %218 }
 0x222   :  { %773 = vlog2.f32 %v219_v50 }
 0x223   :  { %775 = vlog2.f32 %v342_v51  ;;  %v402_v51 = vshll.u32 %v401_v47, 16 }
 0x224   :  { %v1075_v53 = vpop.xlane.xlu0 %433 }
 0x225   :  { %vm435_vm15 = vcmp.eq.f32.partialorder %v1057_v6, %v1075_v53 }
 0x226   :  { %v436_v57 = vsel %vm435_vm15, %v431_v56, inf  ;;  %v954_v56 = vmov 8.0  }
 0x227   :  { %437 = vmin.xlane.f32.xlu1 %v436_v57 }
 0x228   :  { %v774_v59 = vpop.eup %773 }
 0x229   :  { %v221_v60 = vmul.f32 0.6931472, %v774_v59  ;;  %v303_v61 = vpop.xlane.xlu2 %302  ;;  %v776_v0 = vpop.eup %775 }
 0x22a   :  { %777 = vlog2.f32 %v303_v61  ;;  %v344_v4 = vmul.f32 0.6931472, %v776_v0  ;;  %v440_v61 = vcvt.f32.s32 %v1075_v53 }
 0x22b   :  { %v222_v1 = vadd.f32 %v221_v60, %v1033_v54  ;;  %779 = vpow2.f32 %v472_v21 }
 0x22c   :  { %v345_v10 = vadd.f32 %v344_v4, %v332_v27  ;;  %v1091_v27 = vld [vmem:[#allocation11] sm:$0xff]  ;;  %v441_v53 = vshll.u32 %v440_v61, 16 }
 0x22d   :  { %v224_v2 = vsel %vm223_vm0, %v222_v1, 0.0  ;;  %v468_v29 = vmul.f32 %v1091_v27, %v1085_v18 }
 0x22e   :  { %225 = vadd.xlane.f32.xlu0 %v224_v2  ;;  %v346_v54 = vsel %vm263_vm1, %v345_v10, 0.0  ;;  %vm638_vm1 = vcmp.eq.s32.totalorder %v1035_v55, 0 }
 0x22f   :  { %265 = vadd.xlane.f32.xlu1 %v264_v3  ;;  %v469_v31 = vsub.f32 %v467_v28, %v468_v29 }
 0x230   :  { %v778_v5 = vpop.eup %777 }
 0x231   :  { %v305_v6 = vmul.f32 0.6931472, %v778_v5  ;;  %v203_v8 = vpop.xlane.xlu2 %202 }
 0x232   :  { %v204_v9 = vrot.slane %v203_v8, 4 }
 0x233   :  { %v306_v11 = vadd.f32 %v305_v6, %v1046_v62  ;;  %v780_v62 = vpop.eup %779 }
 0x234   :  { %v205_v12 = vadd.f32 %v204_v9, %v203_v8  ;;  %v474_v23 = vadd.f32 1.0, %v780_v62 }
 0x235   :  { %v307_v13 = vsel %vm223_vm0, %v306_v11, 0.0 }
 0x236   :  { %v206_v14 = vrot.slane %v205_v12, 2  ;;  %308 = vadd.xlane.f32.xlu0 %v307_v13  ;;  %781 = vlog2.f32 %v474_v23 }
 0x237   :  { %347 = vadd.xlane.f32.xlu1 %v346_v54  ;;  %783 = vpow2.f32 %v547_v26 }
 0x238   :  { %v207_v15 = vadd.f32 %v206_v14, %v205_v12  ;;  %v956_v12 = vmov 2.0   ;;  %v521_v14 = vsel %vm520_vm8, 1.0, %v955_v45  ;;  %vm670_vm8 = vcmp.eq.s32.totalorder %v1035_v55, 8 }
 0x239   :  { %v287_v0 = vpop.xlane.xlu2 %286  ;;  %vm522_vm10 = vcmp.eq.f32.partialorder %v521_v14, %v1091_v27  ;;  %v586_v27 = vsel %vm566_vm3, %v1099_v33, 0.0  ;;  %v959_v14 = vmov 256.0  }
 0x23a   :  { %v208_v16 = vrot.slane %v207_v15, 1  ;;  %v288_v8 = vrot.slane %v287_v0, 4 }
 0x23c   :  { %v209_v17 = vadd.f32 %v208_v16, %v207_v15  ;;  %v782_v30 = vpop.eup %781  ;;  %v289_v54 = vadd.f32 %v288_v8, %v287_v0  ;;  %v958_v8 = vmov 128.0  }
 0x23d   :  { %v476_v32 = vmul.f32 0.6931472, %v782_v30  ;;  %v784_v36 = vpop.eup %783 }
 0x23e   :  { %705 = vpush %v209_v17  ;;  %v562_v38 = vadd.f32 %v784_v36, %v561_v35  ;;  %785 = vrsqrt.f32 %v784_v36  ;;  %vm556_vm4 = vcmp.eq.f32.partialorder %v784_v36, inf  ;;  %v559_v60 = vand.u32 2147483648, %v784_v36 }
 0x23f   :  { %v477_v34 = vadd.f32 %v476_v32, %v469_v31  ;;  %787 = vrcp.f32 %v954_v56  ;;  %vm558_vm6 = vcmp.eq.f32.partialorder %v784_v36, 0.0  ;;  %v290_v22 = vrot.slane %v289_v54, 2 }
 0x240   :  { %v704_v39 = vadd.f32 -1.0, %v562_v38  ;;  %789 = vrcp.f32 %v956_v12 }
 0x241   :  { %v479_v37 = vsel %vm478_vm2, %v477_v34, 0.0  ;;  %v490_v10 = vsel %vm489_vm7, %v477_v34, 0.0  ;;  %v291_v32 = vadd.f32 %v290_v22, %v289_v54  ;;  %vm666_vm7 = vcmp.eq.s32.totalorder %v1035_v55, 7 }
 0x242   :  { %480 = vadd.xlane.f32.xlu1 %v479_v37  ;;  %v564_v40 = vsub.f32 %v704_v39, %v546_v25  ;;  %v491_v15 = vsel %vm478_vm2, %v490_v10, 0.0  ;;  %v523_v25 = vsel %vm522_vm10, 1.0, %v955_v45  ;;  %vm678_vm10 = vcmp.eq.s32.totalorder %v1035_v55, 10 }
 0x243   :  { %v524_v31 = vsel %vm478_vm2, %v523_v25, 0.0  ;;  %vm646_vm2 = vcmp.eq.s32.totalorder %v1035_v55, 2 }
 0x244   :  { %v565_v41 = vmul.f32 0.5, %v564_v40  ;;  %v786_v43 = vpop.eup %785 }
 0x245   :  { %v550_v44 = vmul.f32 %v786_v43, %v784_v36  ;;  %v788_v3 = vpop.eup %787 }
 0x246   :  { %v567_v42 = vsel %vm566_vm3, %v565_v41, 0.0  ;;  %v236_v11 = vmul.f32 8.0, %v788_v3  ;;  %v790_v21 = vpop.eup %789  ;;  %vm240_vm11 = vweird.f32 %v788_v3 }
 0x247   :  { %v551_v46 = vmul.f32 %v786_v43, %v550_v44  ;;  %v368_v28 = vmul.f32 2.0, %v790_v21  ;;  %v292_v44 = vrot.slane %v291_v32, 1  ;;  %vm372_vm12 = vweird.f32 %v790_v21 }
 0x248   :  { %v237_v17 = vsub.f32 1.0, %v236_v11 }
 0x249   :  { %v552_v48 = vmul.f32 0.5, %v551_v46  ;;  %v369_v38 = vsub.f32 1.0, %v368_v28  ;;  %v293_v56 = vadd.f32 %v292_v44, %v291_v32 }
 0x24a   :  { %568 = vadd.xlane.f32.xlu1 %v567_v42  ;;  %v238_v26 = vmul.f32 %v788_v3, %v237_v17 }
 0x24b   :  { %v553_v49 = vsub.f32 1.5, %v552_v48  ;;  %v370_v33 = vmul.f32 %v790_v21, %v369_v38 }
 0x24c   :  { %v239_v35 = vadd.f32 %v788_v3, %v238_v26 }
 0x24d   :  { %v554_v57 = vmul.f32 %v786_v43, %v553_v49 }
 0x24e   :  { %v241_v48 = vsel %vm240_vm11, %v788_v3, %v239_v35 }
 0x24f   :  { %v555_v59 = vmul.f32 %v784_v36, %v554_v57 }
 0x251   :  { %v557_v63 = vsel %vm556_vm4, %v784_v36, %v555_v59  ;;  %vm654_vm4 = vcmp.eq.s32.totalorder %v1035_v55, 4 }
 0x252   :  { %v1108_v2 = vsel %vm558_vm6, %v559_v60, %v557_v63  ;;  %v371_v60 = vadd.f32 %v790_v21, %v370_v33  ;;  %vm662_vm6 = vcmp.eq.s32.totalorder %v1035_v55, 6 }
 0x253   :  { %v624_v5 = vsel %vm566_vm3, %v1108_v2, -inf  ;;  %v605_v57 = vsel %vm566_vm3, %v1108_v2, 0.0  ;;  %vm650_vm3 = vcmp.eq.s32.totalorder %v1035_v55, 3 }
 0x254   :  { %625 = vmax.xlane.f32.xlu1 %v624_v5 }
 0x26f   :  { %s706_s6 = spop %705 }
 0x292   :  { %v399_v50 = vpop.xlane.xlu0 %398 }
 0x293   :  { %v400_v52 = vcvt.f32.s32 %v399_v50 }
 0x295   :  { %v403_v58 = vadd.s32 %v402_v51, %v400_v52 }
 0x297   :  { %vm404_vm5 = vcmp.eq.s32.totalorder %v403_v58, %v1060_v7 }
 0x298   :  { %v405_v1 = vsel %vm404_vm5, 1.0, %v955_v45  ;;  %vm658_vm5 = vcmp.eq.s32.totalorder %v1035_v55, 5 }
 0x299   :  { %v406_v4 = vsel %vm223_vm0, %v405_v1, 0.0  ;;  %v373_v1 = vsel %vm372_vm12, %v790_v21, %v371_v60 }
 0x29a   :  { %v438_v6 = vpop.xlane.xlu1 %437  ;;  %407 = vadd.xlane.f32.xlu2 %v406_v4  ;;  %v957_v4 = vmov 64.0  }
 0x29b   :  { %v439_v9 = vcvt.f32.s32 %v438_v6  ;;  %791 = vrcp.f32 %v957_v4 }
 0x29c   :  { %793 = vrcp.f32 %v958_v8 }
 0x29d   :  { %v442_v13 = vadd.s32 %v441_v53, %v439_v9  ;;  %795 = vrcp.f32 %v959_v14 }
 0x29f   :  { %vm443_vm9 = vcmp.eq.s32.totalorder %v442_v13, %v1060_v7 }
 0x2a0   :  { %v444_v16 = vsel %vm443_vm9, 1.0, %v955_v45  ;;  %vm674_vm9 = vcmp.eq.s32.totalorder %v1035_v55, 9 }
 0x2a1   :  { %v226_v19 = vpop.xlane.xlu0 %225  ;;  %v445_v20 = vsel %vm223_vm0, %v444_v16, 0.0  ;;  %v792_v6 = vpop.eup %791  ;;  %vm642_vm0 = vcmp.eq.s32.totalorder %v1035_v55, 1 }
 0x2a2   :  { %v227_v18 = vrot.slane %v226_v19, 4  ;;  %446 = vadd.xlane.f32.xlu0 %v445_v20  ;;  %v266_v62 = vpop.xlane.xlu1 %265  ;;  %492 = vadd.xlane.f32.xlu2 %v491_v15  ;;  %v502_v12 = vmul.f32 64.0, %v792_v6  ;;  %v1124_v54 = vpop.eup %793  ;;  %vm506_vm13 = vweird.f32 %v792_v6 }
 0x2a3   :  { %v267_v23 = vrot.slane %v266_v62, 4  ;;  %vm539_vm14 = vweird.f32 %v1124_v54 }
 0x2a4   :  { %v228_v24 = vadd.f32 %v227_v18, %v226_v19  ;;  %v503_v21 = vsub.f32 1.0, %v502_v12 }
 0x2a5   :  { %v268_v7 = vadd.f32 %v267_v23, %v266_v62  ;;  %v535_v23 = vmul.f32 128.0, %v1124_v54 }
 0x2a6   :  { %v229_v29 = vrot.slane %v228_v24, 2 }
 0x2a7   :  { %v269_v30 = vrot.slane %v268_v7, 2 }
 0x2a8   :  { %v230_v34 = vadd.f32 %v229_v29, %v228_v24  ;;  %v1127_v24 = vpop.eup %795 }
 0x2a9   :  { %v309_v36 = vpop.xlane.xlu0 %308  ;;  %v270_v37 = vadd.f32 %v269_v30, %v268_v7  ;;  %vm601_vm15 = vweird.f32 %v1127_v24 }
 0x2aa   :  { %v310_v39 = vrot.slane %v309_v36, 4  ;;  %525 = vadd.xlane.f32.xlu0 %v524_v31  ;;  %v348_v40 = vpop.xlane.xlu1 %347  ;;  %v231_v41 = vrot.slane %v230_v34, 1  ;;  %587 = vadd.xlane.f32.xlu2 %v586_v27  ;;  %v504_v31 = vmul.f32 %v792_v6, %v503_v21 }
 0x2ab   :  { %v349_v42 = vrot.slane %v348_v40, 4  ;;  %v271_v43 = vrot.slane %v270_v37, 1 }
 0x2ac   :  { %v311_v46 = vadd.f32 %v310_v39, %v309_v36  ;;  %v232_v47 = vadd.f32 %v231_v41, %v230_v34  ;;  %v536_v34 = vsub.f32 1.0, %v535_v23  ;;  %v597_v36 = vmul.f32 256.0, %v1127_v24 }
 0x2ad   :  { %v350_v49 = vadd.f32 %v349_v42, %v348_v40  ;;  %v272_v50 = vadd.f32 %v271_v43, %v270_v37  ;;  %v505_v42 = vadd.f32 %v792_v6, %v504_v31 }
 0x2ae   :  { %v312_v51 = vrot.slane %v311_v46, 2  ;;  %707 = vpush %v232_v47  ;;  %v598_v33 = vsub.f32 1.0, %v597_v36 }
 0x2af   :  { %v351_v52 = vrot.slane %v350_v49, 2  ;;  %709 = vpush %v241_v48  ;;  %v507_v60 = vsel %vm506_vm13, %v792_v6, %v505_v42 }
 0x2b0   :  { %711 = vpush %v272_v50  ;;  %v313_v58 = vadd.f32 %v312_v51, %v311_v46 }
 0x2b1   :  { %713 = vpush %v293_v56  ;;  %v352_v59 = vadd.f32 %v351_v52, %v350_v49  ;;  %v537_v49 = vmul.f32 %v1124_v54, %v536_v34 }
 0x2b2   :  { %v314_v61 = vrot.slane %v313_v58, 1  ;;  %606 = vadd.xlane.f32.xlu0 %v605_v57 }
 0x2b3   :  { %v353_v63 = vrot.slane %v352_v59, 1  ;;  %v538_v4 = vadd.f32 %v1124_v54, %v537_v49 }
 0x2b4   :  { %v315_v0 = vadd.f32 %v314_v61, %v313_v58 }
 0x2b5   :  { %v354_v45 = vadd.f32 %v353_v63, %v352_v59  ;;  %v481_v3 = vpop.xlane.xlu1 %480  ;;  %v540_v12 = vsel %vm539_vm14, %v1124_v54, %v538_v4 }
 0x2b6   :  { %715 = vpush %v315_v0  ;;  %v482_v2 = vrot.slane %v481_v3, 4 }
 0x2b7   :  { %717 = vpush %v354_v45  ;;  %v599_v45 = vmul.f32 %v1127_v24, %v598_v33 }
 0x2b8   :  { %719 = vpush %v373_v1  ;;  %v483_v11 = vadd.f32 %v482_v2, %v481_v3 }
 0x2ba   :  { %v484_v16 = vrot.slane %v483_v11, 2 }
 0x2bc   :  { %v485_v30 = vadd.f32 %v484_v16, %v483_v11 }
 0x2bd   :  { %v569_v10 = vpop.xlane.xlu1 %568 }
 0x2be   :  { %v570_v20 = vrot.slane %v569_v10, 4  ;;  %v486_v41 = vrot.slane %v485_v30, 1 }
 0x2c0   :  { %v571_v29 = vadd.f32 %v570_v20, %v569_v10  ;;  %v487_v58 = vadd.f32 %v486_v41, %v485_v30  ;;  %v600_v10 = vadd.f32 %v1127_v24, %v599_v45 }
 0x2c2   :  { %v572_v39 = vrot.slane %v571_v29, 2 }
 0x2c4   :  { %v573_v63 = vadd.f32 %v572_v39, %v571_v29 }
 0x2c7   :  { %v626_v28 = vpop.xlane.xlu1 %625 }
 0x2c8   :  { %v627_v35 = vrot.slane %v626_v28, 4 }
 0x2ca   :  { %v628_v50 = vmax.f32 %v626_v28, %v627_v35 }
 0x2cc   :  { %v629_v0 = vrot.slane %v628_v50, 2 }
 0x2ce   :  { %v630_v6 = vmax.f32 %v628_v50, %v629_v0 }
 0x2df   :  { %s708_s7 = spop %707 }
 0x2e0   :  { %s1138_s30 = spop %709  ;;  %s234_s15 = ssub.f32 %s708_s7, %s706_s6 }
 0x2e1   :  { %s712_s9 = spop %711 }
 0x2e2   :  { %s714_s10 = spop %713  ;;  %s274_s18 = ssub.f32 %s712_s9, %s706_s6 }
 0x2e3   :  { %s243_s21 = smul.f32 %s1138_s30, %s234_s15 }
 0x2e4   :  { %s283_s24 = smul.f32 %s1138_s30, %s274_s18 }
 0x2e6   :  { %s366_s3 = sadd.f32 %s283_s24, %s243_s21 }
 0x2e7   :  { %s716_s11 = spop %715 }
 0x2e8   :  { %s718_s12 = spop %717  ;;  %s317_s13 = ssub.f32 %s716_s11, %s714_s10 }
 0x2e9   :  { %s356_s14 = ssub.f32 %s718_s12, %s714_s10  ;;  %s720_s2 = spop %719 }
 0x2ea   :  { %s326_s16 = smul.f32 %s1138_s30, %s317_s13 }
 0x2eb   :  { %s365_s17 = smul.f32 %s1138_s30, %s356_s14 }
 0x2ec   :  { %s375_s28 = smul.f32 %s720_s2, %s366_s3 }
 0x2ed   :  { %s376_s22 = sadd.f32 %s365_s17, %s326_s16 }
 0x2ef   :  { %s385_s5 = smul.f32 %s720_s2, %s376_s22  ;;  %s960_s22 = smov [#allocation12]  }
 0x2f1   :  { %s386_s7 = sadd.f32 %s385_s5, %s375_s28 }
 0x2f3   :  { %v643_v54 = vstv %s386_s7 }
 0x30d   :  { %v408_v5 = vpop.xlane.xlu2 %407 }
 0x30e   :  { %v409_v53 = vrot.slane %v408_v5, 4 }
 0x310   :  { %v410_v9 = vadd.f32 %v409_v53, %v408_v5  ;;  %v574_v53 = vrot.slane %v573_v63, 1 }
 0x312   :  { %v411_v13 = vrot.slane %v410_v9, 2 }
 0x314   :  { %v412_v15 = vadd.f32 %v411_v13, %v410_v9 }
 0x315   :  { %v447_v17 = vpop.xlane.xlu0 %446  ;;  %v493_v19 = vpop.xlane.xlu2 %492 }
 0x316   :  { %v448_v18 = vrot.slane %v447_v17, 4  ;;  %v494_v62 = vrot.slane %v493_v19, 4  ;;  %v413_v22 = vrot.slane %v412_v15, 1 }
 0x318   :  { %v449_v25 = vadd.f32 %v448_v18, %v447_v17  ;;  %v495_v26 = vadd.f32 %v494_v62, %v493_v19  ;;  %v414_v7 = vadd.f32 %v413_v22, %v412_v15  ;;  %v575_v15 = vadd.f32 %v574_v53, %v573_v63 }
 0x319   :  { %v602_v17 = vsel %vm601_vm15, %v1127_v24, %v600_v10  ;;  %v631_v19 = vrot.slane %v630_v6, 1  ;;  %v644_v24 = vsel %vm642_vm0, %v643_v54, 0.0 }
 0x31a   :  { %v450_v32 = vrot.slane %v449_v25, 2  ;;  %v496_v27 = vrot.slane %v495_v26, 2  ;;  %721 = vpush %v414_v7 }
 0x31b   :  { %v632_v18 = vmax.f32 %v630_v6, %v631_v19 }
 0x31c   :  { %v451_v37 = vadd.f32 %v450_v32, %v449_v25  ;;  %v497_v38 = vadd.f32 %v496_v27, %v495_v26 }
 0x31d   :  { %v526_v40 = vpop.xlane.xlu0 %525  ;;  %v588_v43 = vpop.xlane.xlu2 %587 }
 0x31e   :  { %v527_v44 = vrot.slane %v526_v40, 4  ;;  %v452_v46 = vrot.slane %v451_v37, 1  ;;  %v498_v47 = vrot.slane %v497_v38, 1  ;;  %v589_v48 = vrot.slane %v588_v43, 4 }
 0x320   :  { %v528_v51 = vadd.f32 %v527_v44, %v526_v40  ;;  %v453_v52 = vadd.f32 %v452_v46, %v451_v37  ;;  %v499_v56 = vadd.f32 %v498_v47, %v497_v38  ;;  %v590_v57 = vadd.f32 %v589_v48, %v588_v43 }
 0x322   :  { %v529_v59 = vrot.slane %v528_v51, 2  ;;  %723 = vpush %v453_v52  ;;  %v591_v61 = vrot.slane %v590_v57, 2 }
 0x323   :  { %725 = vpush %v487_v58 }
 0x324   :  { %727 = vpush %v499_v56  ;;  %v592_v1 = vadd.f32 %v591_v61, %v590_v57  ;;  %v530_v3 = vadd.f32 %v529_v59, %v528_v51 }
 0x325   :  { %729 = vpush %v507_v60  ;;  %v607_v5 = vpop.xlane.xlu0 %606 }
 0x326   :  { %v531_v2 = vrot.slane %v530_v3, 1  ;;  %v608_v8 = vrot.slane %v607_v5, 4  ;;  %v593_v9 = vrot.slane %v592_v1, 1 }
 0x328   :  { %v532_v11 = vadd.f32 %v531_v2, %v530_v3  ;;  %v609_v13 = vadd.f32 %v608_v8, %v607_v5  ;;  %v594_v14 = vadd.f32 %v593_v9, %v592_v1 }
 0x32a   :  { %731 = vpush %v532_v11  ;;  %v610_v16 = vrot.slane %v609_v13, 2 }
 0x32b   :  { %733 = vpush %v540_v12 }
 0x32c   :  { %735 = vpush %v575_v15  ;;  %v611_v20 = vadd.f32 %v610_v16, %v609_v13 }
 0x32d   :  { %737 = vpush %v594_v14 }
 0x32e   :  { %739 = vpush %v602_v17  ;;  %v612_v21 = vrot.slane %v611_v20, 1 }
 0x330   :  { %v613_v62 = vadd.f32 %v612_v21, %v611_v20 }
 0x332   :  { %741 = vpush %v613_v62 }
 0x333   :  { %743 = vpush %v632_v18 }
 0x34b   :  { %s1142_s19 = spop %721 }
 0x34c   :  { %s416_s13 = smul.f32 100.0, %s1142_s19 }
 0x34e   :  { %s425_s16 = smul.f32 %s1138_s30, %s416_s13 }
 0x350   :  { %v659_v32 = vstv %s425_s16 }
 0x351   :  { %v660_v37 = vsel %vm658_vm5, %v659_v32, 0.0 }
 0x353   :  { %s1144_s20 = spop %723 }
 0x354   :  { %s726_s4 = spop %725  ;;  %s455_s15 = smul.f32 100.0, %s1144_s20 }
 0x355   :  { %s728_s23 = spop %727 }
 0x356   :  { %s510_s25 = ssub.f32 %s726_s4, %s728_s23  ;;  %s730_s1 = spop %729 }
 0x357   :  { %s509_s6 = smul.f32 %s730_s1, %s728_s23  ;;  %s688_s23 = sshll.u32 %s960_s22, 4  ;;  %s689_s23 = int_to_ptr.vmem [resolvable:$true] %s688_s23 }
 0x358   :  { %s519_s26 = smul.f32 %s730_s1, %s510_s25  ;;  %s690_s1 = sshll.u32 %s1181_s8, 4  ;;  %s691_s1 = int_to_ptr.hbm [resolvable:$true] %s690_s1 }
 0x359   :  { %v651_v26 = vstv %s509_s6  ;;  %s464_s2 = smul.f32 %s1138_s30, %s455_s15 }
 0x35a   :  { %s634_s0 = smul.f32 0.1, %s519_s26  ;;  %v647_v22 = vstv %s519_s26  ;;  %v652_v31 = vsel %vm650_vm3, %v651_v26, 0.0 }
 0x35b   :  { %s1148_s27 = spop %731  ;;  %v648_v28 = vsel %vm646_vm2, %v647_v22, 0.0  ;;  %v663_v35 = vstv %s464_s2 }
 0x35c   :  { %s1150_s29 = spop %733  ;;  %s635_s10 = sadd.f32 %s634_s0, %s509_s6  ;;  %v664_v40 = vsel %vm662_vm6, %v663_v35, 0.0 }
 0x35d   :  { %s736_s9 = spop %735  ;;  %s542_s19 = smul.f32 %s1150_s29, %s1148_s27 }
 0x35e   :  { %s585_s11 = smul.f32 %s736_s9, %s1138_s30  ;;  %s738_s17 = spop %737 }
 0x35f   :  { %s740_s18 = spop %739  ;;  %v667_v38 = vstv %s542_s19 }
 0x360   :  { %s636_s12 = sadd.f32 %s635_s10, %s585_s11  ;;  %v655_v30 = vstv %s585_s11  ;;  %s604_s21 = smul.f32 %s740_s18, %s738_s17  ;;  %v668_v43 = vsel %vm666_vm7, %v667_v38, 0.0 }
 0x361   :  { %v656_v34 = vsel %vm654_vm4, %v655_v30, 0.0 }
 0x362   :  { %s637_s14 = sadd.f32 %s636_s12, %s386_s7  ;;  %v671_v42 = vstv %s604_s21 }
 0x363   :  { %s742_s20 = spop %741  ;;  %v672_v47 = vsel %vm670_vm8, %v671_v42, 0.0 }
 0x364   :  { %v639_v23 = vstv %s637_s14  ;;  %s623_s30 = smul.f32 %s742_s20, %s740_s18  ;;  %s744_s4 = spop %743 }
 0x365   :  { %v640_v25 = vsel %vm638_vm1, %v639_v23, 0.0  ;;  %v679_v49 = vstv %s744_s4 }
 0x366   :  { %v645_v7 = vadd.f32 %v644_v24, %v640_v25  ;;  %v675_v46 = vstv %s623_s30  ;;  %v680_v51 = vsel %vm678_vm10, %v679_v49, 0.0 }
 0x367   :  { %v676_v50 = vsel %vm674_vm9, %v675_v46, 0.0 }
 0x368   :  { %v649_v29 = vadd.f32 %v648_v28, %v645_v7 }
 0x36a   :  { %v653_v27 = vadd.f32 %v652_v31, %v649_v29 }
 0x36c   :  { %v657_v36 = vadd.f32 %v656_v34, %v653_v27 }
 0x36e   :  { %v661_v39 = vadd.f32 %v660_v37, %v657_v36 }
 0x370   :  { %v665_v41 = vadd.f32 %v664_v40, %v661_v39 }
 0x372   :  { %v669_v44 = vadd.f32 %v668_v43, %v665_v41 }
 0x374   :  { %v673_v48 = vadd.f32 %v672_v47, %v669_v44 }
 0x376   :  { %v677_v33 = vadd.f32 %v676_v50, %v673_v48 }
 0x378   :  { %v681_v52 = vadd.f32 %v680_v51, %v677_v33 }
 0x37a   :  { %682 = vst [vmem:[#allocation12] sm:$0x1] %v681_v52 }
 0x37b   :  { %693 = dma.vmem_to_hbm [thread:$0]  %s689_s23, 16, %s691_s1, [#allocation5]  }
 0x37c   :  { %947 = dma.done.wait [#allocation5], 16  }
 0x37d   :  { %948 = vsyncadd [#allocation5], 4294967280 }
 0x37e   :  { %698 = vsyncpa [#allocation4], 1 }
 0x37f   :  { %699 = vsyncpa [#allocation7], 1 }
 0x380   :  { %700 = vsyncpa [#allocation10], 1 }
 0x381   :  { %701 = vsyncpa [#allocation5], 1 }

</bundles_post_ra>
